<compile_context>
chip_gen: v7x
topology: tpu7x:2x2x1
jax: 0.10.0
libtpu: 0.0.40
codegen_flags: <defaults>
</compile_context>

<pallas_src>
import jax
import jax.numpy as jnp
from jax.experimental import pallas as pl
from jax.experimental.pallas import tpu as pltpu


def _hadamard_kernel(x_ref, scale_ref, o_ref):
    # x_ref:     (tr, bm) VMEM tile of the input
    # scale_ref: (tr, 1)  f32 per-row scale = p repeated response_dim times
    # o_ref:     (tr, bm) lane-dense output tile
    # Multiply in the promoted (f32) precision, cast once on store.  The VPU /
    # broadcast work is free filler at HBM roofline.
    o_ref[...] = (x_ref[...] * scale_ref[...]).astype(o_ref.dtype)


def _round_down(v, mult):
    return (v // mult) * mult


def _choose_tiles(r, m, itemsize, *, target_tile_bytes=4 << 20):
    """Pick (row_block, col_block) from a per-buffer VMEM byte budget.

    The kernel is HBM-bandwidth bound, so we want the largest lane-dense tile
    whose double-buffered working set (~2x in + 2x out + scale ~= 4 tiles)
    stays comfortably inside scoped VMEM on every generation (v7x is the
    tightest at 64 MiB physical), while guaranteeing >= 2 grid steps so v7x's
    two TensorCores can both take work.
    """
    budget_elems = max(8 * 128, target_tile_bytes // itemsize)

    # Column block: multiple of 128 (lane-dense, unmasked vst), or the full
    # extent when m < 128.  Partial trailing column blocks are handled by
    # Pallas' masked writeback, so m need not divide bm.
    if m <= 128:
        bm = m
    else:
        bm = min(_round_down(m, 128),
                 max(128, _round_down(budget_elems // 8, 128)))

    # Row block: multiple of 8 (sublane), or the full extent; fill the rest of
    # the byte budget.  Partial trailing row blocks are likewise masked.
    rows_fit = max(8, budget_elems // max(bm, 1))
    tr = r if rows_fit >= r else max(8, _round_down(rows_fit, 8))

    # Guarantee >= 2 grid steps (megacore on v7x): split the M axis if it is
    # wide enough for two lane-dense halves, otherwise split the R axis.
    if pl.cdiv(r, tr) * pl.cdiv(m, bm) < 2:
        if bm >= 256:
            bm = max(128, _round_down(bm // 2, 128))
        elif tr >= 16:
            tr = max(8, _round_down(tr // 2, 8))

    return tr, bm


def hadamard_repara_forward(x, p, response_dim, *,
                            target_tile_bytes=4 << 20,
                            donate_x=False):
    """x: [K*D, M]; p: [K, 1] (PyTorch parameter layout). Returns x * repeat(p)."""
    r, m = x.shape
    k = p.shape[0]
    assert r == k * response_dim, "x rows must equal num_clusters * response_dim"

    # p.repeat_interleave(response_dim, dim=0): [K, 1] -> [K*D, 1].  Tiny
    # (K*D values) parameter expansion -> plain JAX.  Keep it in f32 so the
    # multiply inside the kernel promotes (matches PyTorch's type-promoted
    # mul) instead of pre-downcasting the scale when x is bf16/fp8.
    scale = jnp.repeat(p.astype(jnp.float32), response_dim, axis=0)  # [R, 1]

    tr, bm = _choose_tiles(r, m, x.dtype.itemsize,
                           target_tile_bytes=target_tile_bytes)
    grid = (pl.cdiv(r, tr), pl.cdiv(m, bm))

    out = pl.pallas_call(
        _hadamard_kernel,
        out_shape=jax.ShapeDtypeStruct((r, m), x.dtype),
        grid_spec=pltpu.PrefetchScalarGridSpec(
            num_scalar_prefetch=0,
            grid=grid,
            in_specs=[
                pl.BlockSpec((tr, bm), lambda i, j: (i, j)),
                pl.BlockSpec((tr, 1), lambda i, j: (i, 0)),
            ],
            out_specs=pl.BlockSpec((tr, bm), lambda i, j: (i, j)),
        ),
        compiler_params=pltpu.CompilerParams(
            dimension_semantics=("parallel", "parallel"),
            # Raise the scoped-VMEM default (16 MiB v5e / 32 MiB v6e,v7x) so
            # the byte-budgeted tiles can be realized; 48 MiB fits within
            # v7x's 64 MiB physical VMEM with headroom.
            vmem_limit_bytes=48 << 20,
        ),
        # If x is dead after the call, pass donate_x=True to write in place
        # and save an R*M*itemsize HBM allocation.
        input_output_aliases=({0: 0} if donate_x else {}),
    )(x, scale)
    return out


def _reference_forward(x, p, response_dim):
    return x * jnp.repeat(p, response_dim, axis=0)


if __name__ == "__main__":
    # Small shapes consistent with the module:
    #   num_clusters K = 4, response_dim D = 8 -> R = K*D = 32 rows; M = 256 cols.
    K, D, M = 4, 8, 256
    R = K * D

    key = jax.random.PRNGKey(0)
    kx, kp = jax.random.split(key)
    x = jax.random.normal(kx, (R, M), dtype=jnp.float32)
    # Module initializes p to ones; use random values so the test is meaningful
    # (p is a trainable parameter).
    p = jax.random.normal(kp, (K, 1), dtype=jnp.float32)

    # At this demo size the tile chooser yields (tr, bm) = (32, 128) -> a
    # 2-step grid along M (exercises pipelining / megacore split).
    out = hadamard_repara_forward(x, p, D)
    out = jax.block_until_ready(out)

    ref = _reference_forward(x, p, D)
    assert out.shape == (R, M)
    assert out.dtype == x.dtype
    assert jnp.allclose(out, ref, atol=1e-6, rtol=1e-6)

    print("KERNEL_OK")
</pallas_src>

<mosaic_0001>
module attributes {stable_mosaic.version = 11 : i64} {
  func.func @_hadamard_kernel(%arg0: i32, %arg1: i32, %arg2: memref<32x128xf32, #tpu.memory_space<vmem>>, %arg3: memref<32x1xf32, #tpu.memory_space<vmem>>, %arg4: memref<32x128xf32, #tpu.memory_space<vmem>>) attributes {dimension_semantics = [#tpu.dimension_semantics<parallel>, #tpu.dimension_semantics<parallel>], iteration_bounds = array<i64: 1, 2>, scalar_prefetch = 0 : i64, scratch_operands = 0 : i64, tpu.core_type = #tpu.core_type<tc>, window_params = [{transform_indices = @transform_0, window_bounds = array<i64: 32, 128>}, {transform_indices = @transform_1, window_bounds = array<i64: 32, 1>}, {transform_indices = @transform_2, window_bounds = array<i64: 32, 128>}]} {
    %c0 = arith.constant 0 : index
    %c0_0 = arith.constant 0 : index
    %0 = vector.load %arg2[%c0, %c0_0] : memref<32x128xf32, #tpu.memory_space<vmem>>, vector<32x128xf32>
    %c0_1 = arith.constant 0 : index
    %c0_2 = arith.constant 0 : index
    %1 = vector.load %arg3[%c0_1, %c0_2] : memref<32x1xf32, #tpu.memory_space<vmem>>, vector<32x1xf32>
    %2 = vector.broadcast %1 : vector<32x1xf32> to vector<32x128xf32>
    %3 = arith.mulf %0, %2 : vector<32x128xf32>
    %c0_3 = arith.constant 0 : index
    %c0_4 = arith.constant 0 : index
    %4 = vector.load %arg4[%c0_3, %c0_4] : memref<32x128xf32, #tpu.memory_space<vmem>>, vector<32x128xf32>
    tpu.vector_store %arg4[%c0_3, %c0_4], %3 {strides = array<i32>} : memref<32x128xf32, #tpu.memory_space<vmem>>, vector<32x128xf32>,
    return
  }
  func.func @transform_0(%arg0: i32, %arg1: i32) -> (i32, i32) {
    %c0_i32 = arith.constant 0 : i32
    return %arg0, %arg1 : i32, i32
  }
  func.func @transform_1(%arg0: i32, %arg1: i32) -> (i32, i32) {
    %c0_i32 = arith.constant 0 : i32
    %c0_i32_0 = arith.constant 0 : i32
    return %arg0, %c0_i32 : i32, i32
  }
  func.func @transform_2(%arg0: i32, %arg1: i32) -> (i32, i32) {
    %c0_i32 = arith.constant 0 : i32
    return %arg0, %arg1 : i32, i32
  }
}

</mosaic_0001>

<bundles_post_ra>
// kernel: tpu_custom_call.1
= control target key start
LH: loop header
LB: loop body
LE: loop exit
PB: predicated region body
PF: predicated region fallthrough
CT: control target
= control target key end

     0   :  { %7 = vsyncpa [#allocation3], 0  ;;  %s764_s0 = inlined_call_operand.hbm [shape: f32[32,256], index: 0, kind: input, shape index: {}]   ;;  %s765_s1 = inlined_call_operand.vmem [shape: f32[32,1], index: 1, kind: input, shape index: {}]   ;;  %s766_s2 = inlined_call_operand.hbm [shape: f32[32,256], index: 2, kind: output, shape index: {}]  }
   0x1   :  { %9 = vsyncpa [#allocation3 + $0x1], 0 }
   0x2   :  { %10 = vsyncpa [#allocation4], 0 }
   0x3   :  { %12 = vsyncpa [#allocation4 + $0x1], 0  ;;  %s579_s9 = smov 0   ;;  %s581_s10 = smov 0  }
   0x4   :  { %s583_s11 = smov 0   ;;  %s585_s12 = smov 0  }
   0x5   :  { %s587_s13 = smov 0   ;;  %s589_s14 = smov 0  }
   0x6 LB: > { %s356_s15 = sadd.s32 4294967295, %s553_s14   ;;  %s357_s16 = sadd.s32 4294967294, %s553_s14   ;;  %s553_s14 = sphi %s589_s14, %s18_s14   ;;  %s549_s13 = sphi %s587_s13, %s780_s13   ;;  %s545_s12 = sphi %s585_s12, %s779_s12   ;;  %s541_s11 = sphi %s583_s11, %s778_s11   ;;  %s537_s10 = sphi %s581_s10, %s777_s10   ;;  %s533_s9 = sphi %s579_s9, %s776_s9  }
   0x7   : > { %s27_s17 = sadd.s32 1, %s549_s13  ;;  %s39_s18 = sadd.s32 1, %s541_s11 }
   0x8   : > { %p28_p0 = scmp.ge.s32.totalorder %s27_s17, 2  ;;  %p46_p1 = scmp.ne.s32.totalorder %s541_s11, %s537_s10 }
   0x9   : > { %p47_p2 = scmp.eq.s32.totalorder %s553_s14, 0  ;;  %p52_p3 = scmp.ne.s32.totalorder %s537_s10, %s533_s9 }
   0xa   : > { %s782_s17 = smov (%p28_p0, %s27_s17), 0  ;;  %p53_p5 = scmp.eq.s32.totalorder %s356_s15, 0 }
   0xb   : > { %p620_p4 = por %p47_p2, %p46_p1  ;;  %s35_s20 = ssub.s32 %s549_s13, %s782_s17 }
   0xc   : > { %p104_p6 = scmp.eq.s32.totalorder %s356_s15, 1  ;;  %p37_p7 = scmp.eq.s32.totalorder %s35_s20, 0 }
   0xd   : > { %p626_p8 = por %p53_p5, %p52_p3  ;;  %p110_p10 = scmp.eq.s32.totalorder %s357_s16, 1 }
   0xe   : > { %p630_p9 = por %p104_p6, %p46_p1  ;;  %p382_p13 = scmp.lt.s32.totalorder %s553_s14, 2 }
   0xf   : > { %s635_s23 = scalar_select %p37_p7, %s541_s11, %s39_s18  }
  0x10   : > { %s770_s22 = scalar_select %p630_p9, 1, 0 }
  0x11   : > { %p637_p11 = por %p110_p10, %p52_p3  ;;  %s139_s25 = sand.u32 1, %s541_s11  }
  0x12   : > { %s361_s26 = sshll.u32 %s139_s25, 5  ;;  %s362_s27 = sshll.u32 %s549_s13, 7 }
  0x13   : > { %s771_s24 = scalar_select %p637_p11, 1, 0 }
  0x14   : > { %s648_s30 = scalar_lea.hbm %s764_s0, %s362_s27  ;;  %s143_s3 = scalar_lea.vmem [#allocation2], %s361_s26 }
  0x15   : > { %s152_s4 = sshll.u32 %s143_s3, 4  ;;  %p654_p0 = pnand %p382_p13, %p620_p4  ;;  %s650_s4 = int_to_ptr.vmem [resolvable:$true] %s152_s4 }
  0x16   : > { %s658_s6 = scalar_lea.sflag [#allocation3], %s139_s25  ;;  %s441_s7 = scalar_lea.hbm %s648_s30, 512 }
  0x17   : > { %p442_p1 = scmp.ne.s32.totalorder %s648_s30, %s441_s7  ;;  %p443_p2 = pneg %p654_p0 }
  0x18   : > { %s446_s16 = scalar_lea.hbm %s764_s0, 1024  ;;  %p447_p4 = scmp.lt.u32.totalorder %s648_s30, %s764_s0 }
  0x19   : > { %p444_p3 = pnand %p443_p2, %p442_p1  ;;  %p448_p6 = scmp.lt.u32.totalorder %s446_s16, %s441_s7 }
  0x1a   : > { %p450_p10 = scmp.lt.u32.totalorder %s441_s7, %s648_s30 }
  0x1b   : > { %p445_p5 = pneg %p444_p3  ;;  %p449_p7 = por %p448_p6, %p447_p4 }
  0x1d   : > { %p451_p13 = por %p450_p10, %p449_p7 }
  0x1f   : > { %p452_p12 = pnand %p451_p13, %p445_p5 }
  0x21   : > { %455 = shalt.err (!%p452_p12)
}
  0x22   : > { %s456_s20 = scalar_lea.vmem %s650_s4, 512  ;;  %s555_s25 = smov [#allocation2]  }
  0x23   : > { %p457_p1 = scmp.ne.s32.totalorder %s650_s4, %s456_s20  ;;  %s461_s26 = sshll.u32 %s555_s25, 4  ;;  %s462_s26 = int_to_ptr.vmem [resolvable:$false] %s461_s26 }
  0x24   : > { %s463_s27 = scalar_lea.vmem %s462_s26, 1024  ;;  %p464_p9 = scmp.lt.s32.totalorder %s650_s4, %s462_s26 }
  0x25   : > { %p459_p3 = pnand %p457_p1, %p443_p2  ;;  %p465_p4 = scmp.lt.s32.totalorder %s463_s27, %s456_s20 }
  0x27   : > { %p460_p11 = pneg %p459_p3  ;;  %p466_p6 = por %p465_p4, %p464_p9 }
  0x29   : > { %p467_p7 = pnand %p466_p6, %p460_p11 }
  0x2b   : > { %470 = shalt.err (!%p467_p7)
}
  0x2c   : > { %s556_s28 = smov 256   ;;  %s557_s29 = smov 128  }
  0x2d   : > { %s558_s3 = smov 8   ;;  %p363_p12 = scmp.ge.s32.totalorder %s553_s14, 1 }
  0x2e   : > { %377 = dma.hbm_to_vmem [thread:$0]  (!%p654_p0), %s648_s30, 512, %s650_s4, %s658_s6, %s556_s28, %s557_s29, %s558_s3  }
  0x2f   : > { %p160_p2 = scmp.lt.s32.totalorder %s553_s14, 3 }
  0x31   : > { %p161_p5 = pnand %p363_p12, %p160_p2 }
  0x32   : > { %s689_s7 = sand.u32 (!%p161_p5), 1, %s537_s10  }
  0x33   : > { %164 = sbr.rel (%p161_p5) target bundleno = 211 (0xd3), region = 28  ;;  %s364_s8 = sshll.u32 (!%p161_p5), %s689_s7, 5 }
  0x34   : > { %s167_s15 = scalar_lea.sflag (!%p161_p5), [#allocation3], %s689_s7  ;;  %s170_s16 = scalar_lea.vmem (!%p161_p5), [#allocation2], %s364_s8 }
  0x3a   : > { %524 = dma.done.wait (%p626_p8), %s167_s15, 512  }
  0x3b   : > { %526 = vsyncadd (%p626_p8), %s167_s15, 4294966784  ;;  %v559_v0 = vmov 0   ;;  %v210_v1 = vld [vmem:[%s765_s1 + $0x10] sm:$0xff]  ;;  %v208_v2 = vld [vmem:[%s765_s1] sm:$0xff]  ;;  %s195_s25 = scalar_lea.vmem [#allocation5], %s364_s8  ;;  %s367_s27 = sshll.u32 %s545_s12, 7 }
  0x3c   : > { %440 = vset.pattern.permute.xlu1 %v559_v0  ;;  %439 = vset.pattern.permute.xlu0 %v559_v0  ;;  %v211_v3 = vld [vmem:[%s765_s1 + $0x18] sm:$0xff]  ;;  %v209_v4 = vld [vmem:[%s765_s1 + $0x8] sm:$0xff]  ;;  %v206_v5 = vld [vmem:[%s170_s16 + $0x10] sm:$0xff]  ;;  %s256_s26 = sshll.u32 %s195_s25, 4  ;;  %s715_s3 = scalar_lea.hbm %s766_s2, %s367_s27  ;;  %s710_s26 = int_to_ptr.vmem [resolvable:$true] %s256_s26 }
  0x3d   : > { %224 = vperm.xlu1 %440, %v210_v1   ;;  %214 = vperm.xlu0 %439, %v208_v2   ;;  %v204_v6 = vld [vmem:[%s170_s16] sm:$0xff]  ;;  %v207_v11 = vld [vmem:[%s170_s16 + $0x18] sm:$0xff]  ;;  %v205_v12 = vld [vmem:[%s170_s16 + $0x8] sm:$0xff]  ;;  %s241_s12 = scalar_lea.sflag [#allocation4], %s689_s7  ;;  %s471_s8 = scalar_lea.vmem %s710_s26, 512 }
  0x3e   : > { %p472_p8 = scmp.ne.s32.totalorder %s710_s26, %s471_s8  ;;  %p773_p9 = scmp.ne.s32.totalorder %s770_s22, 0 }
  0x3f   : > { %s560_s15 = smov [#allocation5]  }
  0x40   : > { %p473_p11 = pnand %p472_p8, %p773_p9  ;;  %s475_s16 = sshll.u32 %s560_s15, 4  ;;  %s476_s16 = int_to_ptr.vmem [resolvable:$false] %s475_s16 }
  0x41   : > { %229 = vperm.xlu1 %440, %v211_v3   ;;  %219 = vperm.xlu0 %439, %v209_v4   ;;  %s477_s30 = scalar_lea.vmem %s476_s16, 1024  ;;  %p478_p10 = scmp.lt.s32.totalorder %s710_s26, %s476_s16 }
  0x42   : > { %p474_p0 = pneg %p473_p11  ;;  %p479_p13 = scmp.lt.s32.totalorder %s477_s30, %s471_s8 }
  0x44   : > { %p480_p1 = por %p479_p13, %p478_p10 }
  0x46   : > { %p481_p3 = pnand %p480_p1, %p474_p0 }
  0xbc   : > { %v225_v7 = vpop.permute.xlu1 %224  ;;  %v215_v8 = vpop.permute.xlu0 %214 }
  0xbd   : > { %v234_v9 = vmul.f32 %v225_v7, %v206_v5  ;;  %v232_v10 = vmul.f32 %v215_v8, %v204_v6 }
  0xbf   : > { %238 = vst [vmem:[%s195_s25 + $0x10] sm:$0xff] %v234_v9  ;;  %236 = vst [vmem:[%s195_s25] sm:$0xff] %v232_v10 }
  0xc0   : > { %v230_v13 = vpop.permute.xlu1 %229  ;;  %v220_v14 = vpop.permute.xlu0 %219 }
  0xc1   : > { %v235_v15 = vmul.f32 %v230_v13, %v207_v11  ;;  %v233_v16 = vmul.f32 %v220_v14, %v205_v12 }
  0xc3   : > { %239 = vst [vmem:[%s195_s25 + $0x18] sm:$0xff] %v235_v15  ;;  %237 = vst [vmem:[%s195_s25 + $0x8] sm:$0xff] %v233_v16 }
  0xc4   : > { %484 = shalt.err (!%p481_p3)
}
  0xc5   : > { %s485_s4 = scalar_lea.hbm %s715_s3, 512  ;;  %s489_s18 = scalar_lea.hbm %s766_s2, 1024 }
  0xc6   : > { %p486_p4 = scmp.ne.s32.totalorder %s715_s3, %s485_s4  ;;  %p490_p12 = scmp.lt.u32.totalorder %s715_s3, %s766_s2 }
  0xc7   : > { %p491_p2 = scmp.lt.u32.totalorder %s489_s18, %s485_s4  ;;  %p493_p8 = scmp.lt.u32.totalorder %s485_s4, %s715_s3 }
  0xc8   : > { %p487_p6 = pnand %p486_p4, %p773_p9 }
  0xc9   : > { %p492_p5 = por %p491_p2, %p490_p12 }
  0xca   : > { %p488_p7 = pneg %p487_p6 }
  0xcb   : > { %p494_p11 = por %p493_p8, %p492_p5 }
  0xcd   : > { %p495_p0 = pnand %p494_p11, %p488_p7 }
  0xcf   : > { %498 = shalt.err (!%p495_p0)
}
  0xd0   : > { %s561_s20 = smov 128   ;;  %s562_s25 = smov 256  }
  0xd1   : > { %s563_s27 = smov 8  }
  0xd2   : > { %372 = dma.vmem_to_hbm [thread:$0]  (%p773_p9), %s710_s26, 512, %s715_s3, %s241_s12, %s561_s20, %s562_s25, %s563_s27  }
  0xd3 PF: > { %s271_s28 = sand.u32 1, %s533_s9   ;;  %p774_p10 = scmp.ne.s32.totalorder %s771_s24, 0 }
  0xd4   : > { %p775_p13 = scmp.ge.s32.totalorder %s553_s14, 2  ;;  %s272_s29 = scalar_lea.sflag [#allocation4], %s271_s28 }
  0xd6   : > { %p379_p1 = pnand %p775_p13, %p774_p10 }
  0xd8   : > { %528 = dma.done.wait (!%p379_p1), %s272_s29, 512  }
  0xd9   : > { %530 = vsyncadd (!%p379_p1), %s272_s29, 4294966784  ;;  %s18_s14 = sadd.s32 1, %s553_s14   ;;  %s776_s9 = smov %s537_s10 }
  0xda   : > { %p15_p3 = scmp.ge.s32.totalorder %s18_s14, 4   ;;  %s777_s10 = smov %s541_s11 }
  0xdb   : > { %s778_s11 = smov %s635_s23  ;;  %s779_s12 = smov %s549_s13 }
  0xdc   : > { %s780_s13 = smov %s782_s17  ;;  %17 = sbr.rel (!%p15_p3) target bundleno = 6 (0x6), region = 76 }
  0xe3   :  { %277 = vsyncpa [#allocation3], 1 }
  0xe4   :  { %279 = vsyncpa [#allocation3 + $0x1], 1 }
  0xe5   :  { %280 = vsyncpa [#allocation4], 1 }
  0xe6   :  { %282 = vsyncpa [#allocation4 + $0x1], 1 }

</bundles_post_ra>
